<compile_context>
chip_gen: v5e
topology: v5e:2x2
jax: 0.10.0
libtpu: 0.0.40
codegen_flags: <defaults>
</compile_context>

<pallas_src>
import functools

import jax
import jax.numpy as jnp
from jax.experimental import pallas as pl
from jax.experimental.pallas import tpu as pltpu

BN_EPS = 1e-5


# ---------------------------------------------------------------------------
# Kernels
# ---------------------------------------------------------------------------
def _two_pass_kernel(inv_count, l_ref, m_ref, x_ref, gamma_ref, beta_ref,
                     o_ref, sum_ref, sumsq_ref, a_ref, b_ref):
    """Streaming 2R+1W path. Grid: (channel_group, phase, spatial_tile)."""
    p = pl.program_id(1)  # 0 = stats accumulation pass, 1 = write pass
    t = pl.program_id(2)  # spatial tile index

    @pl.when((p == 0) & (t == 0))
    def _init():
        sum_ref[...] = jnp.zeros_like(sum_ref)
        sumsq_ref[...] = jnp.zeros_like(sumsq_ref)

    @pl.when(p == 0)
    def _accumulate():
        x = x_ref[...].astype(jnp.float32)                # (N, cg, T)
        s = jnp.sum(x, axis=2, keepdims=True)             # lane reduce (XLU)
        s2 = jnp.sum(x * x, axis=2, keepdims=True)
        sum_ref[...] += jnp.sum(s, axis=0)                # (cg, 1)
        sumsq_ref[...] += jnp.sum(s2, axis=0)             # (cg, 1)

    @pl.when((p == 1) & (t == 0))
    def _finalize_stats():
        mean = sum_ref[...] * inv_count                   # (cg, 1)
        var = jnp.maximum(sumsq_ref[...] * inv_count - mean * mean, 0.0)
        inv_std = jax.lax.rsqrt(var + BN_EPS)             # (cg, 1)
        scale = gamma_ref[...] * inv_std                  # (cg, 1)
        L = l_ref[0]
        M = m_ref[0]
        a_ref[...] = L + M * scale
        b_ref[...] = M * (beta_ref[...] - mean * scale)

    @pl.when(p == 1)
    def _write():
        a = a_ref[...][None, :, :]                        # (1, cg, 1)
        b = b_ref[...][None, :, :]                        # (1, cg, 1)
        x = x_ref[...].astype(jnp.float32)
        o_ref[...] = (a * x + b).astype(o_ref.dtype)      # single FMA per elem


def _single_pass_kernel(inv_count, n_sub, sub_t,
                        l_ref, m_ref, x_ref, gamma_ref, beta_ref, o_ref):
    """Read-once 1R+1W path. Grid: (channel_group,). Slab resident in VMEM."""
    cg = gamma_ref.shape[0]
    s_acc = jnp.zeros((cg, 1), jnp.float32)
    s2_acc = jnp.zeros((cg, 1), jnp.float32)

    # Static sub-chunk loop over the VMEM-resident slab keeps per-iteration
    # temporaries chunk-sized instead of materializing slab-sized f32 copies.
    for i in range(n_sub):
        x = x_ref[:, :, i * sub_t:(i + 1) * sub_t].astype(jnp.float32)
        s_acc = s_acc + jnp.sum(jnp.sum(x, axis=2, keepdims=True), axis=0)
        s2_acc = s2_acc + jnp.sum(jnp.sum(x * x, axis=2, keepdims=True), axis=0)

    mean = s_acc * inv_count                              # (cg, 1)
    var = jnp.maximum(s2_acc * inv_count - mean * mean, 0.0)
    inv_std = jax.lax.rsqrt(var + BN_EPS)
    scale = gamma_ref[...] * inv_std
    L = l_ref[0]
    M = m_ref[0]
    a = (L + M * scale)[None, :, :]                       # (1, cg, 1)
    b = (M * (beta_ref[...] - mean * scale))[None, :, :]  # (1, cg, 1)

    for i in range(n_sub):
        x = x_ref[:, :, i * sub_t:(i + 1) * sub_t].astype(jnp.float32)
        o_ref[:, :, i * sub_t:(i + 1) * sub_t] = (a * x + b).astype(o_ref.dtype)


# ---------------------------------------------------------------------------
# Wrapper helpers
# ---------------------------------------------------------------------------
def _ceil_to(v, m):
    return ((v + m - 1) // m) * m


def _vmem_capacity_bytes():
    try:
        return int(pltpu.get_tpu_info().vmem_capacity_bytes)
    except Exception:
        return 64 * 1024 * 1024  # conservative (v7x-sized) fallback


def _choose_tile(hw, target_elems):
    """Pick spatial tile T (multiple of 128) and padded extent HWp with T | HWp.

    Prefers an existing divisor of hw (no padding); otherwise pads hw up to a
    multiple of the target-sized tile so awkward factors never collapse to
    T=128 or blow up to T=hw.
    """
    target = max(128, (target_elems // 128) * 128)
    hwp128 = _ceil_to(hw, 128)
    if hwp128 <= target:
        return hwp128, hwp128                              # single spatial tile
    if hw % 128 == 0:
        t = target
        while t >= 128:
            if hw % t == 0:
                break
            t -= 128
        if t >= max(128, target // 2):
            return t, hw                                   # good divisor, no pad
    # Unaligned or only tiny divisors: fixed tile, pad hw up to a multiple.
    return target, _ceil_to(hw, target)


# ---------------------------------------------------------------------------
# Public entry point
# ---------------------------------------------------------------------------
def adaptive_norm(x_nchw, L, M, gamma, beta, *,
                  max_block_bytes=None, allow_single_pass=True):
    """x_nchw: (N, C, H, W).  L, M: (1,).  gamma, beta: (C,)."""
    N, C, H, W = x_nchw.shape
    HW = H * W
    dtype = x_nchw.dtype
    itemsize = jnp.dtype(dtype).itemsize
    inv_count = 1.0 / float(N * HW)

    # Channel grouping: 8-sublane groups when possible (maximizes the number of
    # independent "parallel" groups for v7x megacore); full extent otherwise.
    cg = 8 if (C % 8 == 0) else C
    n_cgroups = C // cg

    vmem_cap = _vmem_capacity_bytes()

    # Free reshape (contiguous dims merge) -- no transpose, no dtype cast.
    x3 = x_nchw.reshape(N, C, HW)
    gamma2d = gamma.reshape(C, 1).astype(jnp.float32)
    beta2d = beta.reshape(C, 1).astype(jnp.float32)
    L1 = L.reshape(1).astype(jnp.float32)
    M1 = M.reshape(1).astype(jnp.float32)

    # ---- path selection -----------------------------------------------------
    sub_t, hwp_sp = _choose_tile(HW, max(128, (1 << 20) // (itemsize * N * cg)))
    n_sub = hwp_sp // sub_t
    slab_bytes = N * cg * hwp_sp * itemsize
    use_single_pass = (allow_single_pass and n_sub <= 32
                       and slab_bytes <= vmem_cap // 6)

    if use_single_pass:
        HWp = hwp_sp
    else:
        if max_block_bytes is None:
            # ~4 MiB blocks on 128 MiB parts (v5e/v6e), ~3 MiB on v7x (64 MiB).
            max_block_bytes = (4 << 20) if vmem_cap >= (96 << 20) else (3 << 20)
        T, HWp = _choose_tile(HW, max(128, max_block_bytes // (itemsize * N * cg)))
        n_tiles = HWp // T

    if HWp != HW:
        # Zero padding does not perturb sum/sumsq (inv_count uses true count);
        # padded output lanes are sliced off below.
        x3 = jnp.pad(x3, ((0, 0), (0, 0), (0, HWp - HW)))

    if use_single_pass:
        kernel = functools.partial(_single_pass_kernel, inv_count, n_sub, sub_t)
        out3 = pl.pallas_call(
            kernel,
            out_shape=jax.ShapeDtypeStruct((N, C, HWp), dtype),
            grid=(n_cgroups,),
            in_specs=[
                pl.BlockSpec(memory_space=pltpu.SMEM),                 # L
                pl.BlockSpec(memory_space=pltpu.SMEM),                 # M
                pl.BlockSpec((N, cg, HWp), lambda c: (0, c, 0)),       # x slab
                pl.BlockSpec((cg, 1), lambda c: (c, 0)),               # gamma
                pl.BlockSpec((cg, 1), lambda c: (c, 0)),               # beta
            ],
            out_specs=pl.BlockSpec((N, cg, HWp), lambda c: (0, c, 0)),
            compiler_params=pltpu.CompilerParams(
                dimension_semantics=("parallel",),
                vmem_limit_bytes=int(vmem_cap * 3 // 4),
            ),
        )(L1, M1, x3, gamma2d, beta2d)
    else:
        kernel = functools.partial(_two_pass_kernel, inv_count)
        block_bytes = N * cg * T * itemsize
        # Live VMEM ~ 2x input block + 2x output block + tiny scratch.
        vmem_limit = min(int(vmem_cap * 3 // 4),
                         max(32 << 20, 4 * block_bytes + (4 << 20)))
        out3 = pl.pallas_call(
            kernel,
            out_shape=jax.ShapeDtypeStruct((N, C, HWp), dtype),
            grid=(n_cgroups, 2, n_tiles),
            in_specs=[
                pl.BlockSpec(memory_space=pltpu.SMEM),                      # L
                pl.BlockSpec(memory_space=pltpu.SMEM),                      # M
                pl.BlockSpec((N, cg, T), lambda c, p, t: (0, c, t)),        # x
                pl.BlockSpec((cg, 1), lambda c, p, t: (c, 0)),              # gamma
                pl.BlockSpec((cg, 1), lambda c, p, t: (c, 0)),              # beta
            ],
            # Output block index pinned to tile 0 during phase 0, so the output
            # buffer stays resident (no garbage write-backs); phase 1 fills each
            # tile completely before its index advances and it is written back.
            out_specs=pl.BlockSpec((N, cg, T), lambda c, p, t: (0, c, t * p)),
            scratch_shapes=[
                pltpu.VMEM((cg, 1), jnp.float32),   # per-channel sum
                pltpu.VMEM((cg, 1), jnp.float32),   # per-channel sum of squares
                pltpu.VMEM((cg, 1), jnp.float32),   # fused scale a
                pltpu.VMEM((cg, 1), jnp.float32),   # fused shift b
            ],
            compiler_params=pltpu.CompilerParams(
                dimension_semantics=("parallel", "arbitrary", "arbitrary"),
                vmem_limit_bytes=vmem_limit,
            ),
        )(L1, M1, x3, gamma2d, beta2d)

    if HWp != HW:
        out3 = out3[:, :, :HW]
    return out3.reshape(N, C, H, W)


def adaptive_norm_ref(x, L, M, gamma, beta):
    """Pure-JAX reference matching PyTorch AdaptiveNorm.forward (training BN)."""
    xf = x.astype(jnp.float32)
    mean = jnp.mean(xf, axis=(0, 2, 3), keepdims=True)
    var = jnp.mean((xf - mean) ** 2, axis=(0, 2, 3), keepdims=True)  # biased
    bn = (xf - mean) / jnp.sqrt(var + BN_EPS)
    bn = bn * gamma.reshape(1, -1, 1, 1) + beta.reshape(1, -1, 1, 1)
    return L.reshape(()) * xf + M.reshape(()) * bn


if __name__ == "__main__":
    L = jnp.array([1.0], dtype=jnp.float32)
    M = jnp.array([0.5], dtype=jnp.float32)

    def check(x, gamma, beta, **kw):
        out = jax.block_until_ready(adaptive_norm(x, L, M, gamma, beta, **kw))
        ref = adaptive_norm_ref(x, L, M, gamma, beta)
        assert out.shape == x.shape and out.dtype == x.dtype
        err = float(jnp.max(jnp.abs(out.astype(jnp.float32) - ref)))
        assert err < 1e-4, err

    # 1) Canonical small shape: exercises the single-pass (read-once) path.
    N, C, H, W = 2, 4, 16, 16
    x = jax.random.normal(jax.random.PRNGKey(0), (N, C, H, W), dtype=jnp.float32)
    gamma = jnp.linspace(0.5, 1.5, C, dtype=jnp.float32)
    beta = jnp.linspace(-0.2, 0.2, C, dtype=jnp.float32)
    check(x, gamma, beta)

    # 2) Multiple channel groups + multiple spatial tiles on the streaming
    #    2-pass path (validates accumulator reset, phase boundary, pinned
    #    output-index trick).
    x2 = jax.random.normal(jax.random.PRNGKey(1), (2, 16, 16, 32), jnp.float32)
    g2 = jnp.linspace(0.7, 1.3, 16, dtype=jnp.float32)
    b2 = jnp.linspace(-0.1, 0.1, 16, dtype=jnp.float32)
    check(x2, g2, b2, allow_single_pass=False, max_block_bytes=8 * 1024)

    # 3) Non-128-multiple spatial size (padding path) on the streaming path.
    x3 = jax.random.normal(jax.random.PRNGKey(2), (2, 8, 10, 13), jnp.float32)
    g3 = jnp.linspace(0.9, 1.1, 8, dtype=jnp.float32)
    b3 = jnp.linspace(-0.05, 0.05, 8, dtype=jnp.float32)
    check(x3, g3, b3, allow_single_pass=False, max_block_bytes=8 * 1024)

    print("KERNEL_OK")
</pallas_src>

<mosaic_0001>
module attributes {stable_mosaic.version = 11 : i64} {
  func.func @_single_pass_kernel(%arg0: i32, %arg1: memref<1xf32, #tpu.memory_space<smem>>, %arg2: memref<1xf32, #tpu.memory_space<smem>>, %arg3: memref<2x4x256xf32, #tpu.memory_space<vmem>>, %arg4: memref<4x1xf32, #tpu.memory_space<vmem>>, %arg5: memref<4x1xf32, #tpu.memory_space<vmem>>, %arg6: memref<2x4x256xf32, #tpu.memory_space<vmem>>) attributes {dimension_semantics = [#tpu.dimension_semantics<parallel>], iteration_bounds = array<i64: 1>, scalar_prefetch = 0 : i64, scratch_operands = 0 : i64, tpu.core_type = #tpu.core_type<tc>, window_params = [{transform_indices = @transform_0, window_bounds = array<i64: 1>}, {transform_indices = @transform_1, window_bounds = array<i64: 1>}, {transform_indices = @transform_2, window_bounds = array<i64: 2, 4, 256>}, {transform_indices = @transform_3, window_bounds = array<i64: 4, 1>}, {transform_indices = @transform_4, window_bounds = array<i64: 4, 1>}, {transform_indices = @transform_5, window_bounds = array<i64: 2, 4, 256>}]} {
    %cst = arith.constant 0.000000e+00 : f32
    %0 = vector.broadcast %cst : f32 to vector<4x1xf32>
    %cst_0 = arith.constant 0.000000e+00 : f32
    %1 = vector.broadcast %cst_0 : f32 to vector<4x1xf32>
    %c0 = arith.constant 0 : index
    %c0_1 = arith.constant 0 : index
    %c0_2 = arith.constant 0 : index
    %2 = vector.load %arg3[%c0, %c0_1, %c0_2] : memref<2x4x256xf32, #tpu.memory_space<vmem>>, vector<2x4x256xf32>
    %cst_3 = arith.constant dense<0.000000e+00> : vector<2x4xf32>
    %3 = vector.multi_reduction <add>, %2, %cst_3 [2] : vector<2x4x256xf32> to vector<2x4xf32>
    %4 = vector.shape_cast %3 : vector<2x4xf32> to vector<2x4x1xf32>
    %cst_4 = arith.constant dense<0.000000e+00> : vector<4x1xf32>
    %5 = vector.multi_reduction <add>, %4, %cst_4 [0] : vector<2x4x1xf32> to vector<4x1xf32>
    %6 = arith.addf %0, %5 : vector<4x1xf32>
    %7 = arith.mulf %2, %2 : vector<2x4x256xf32>
    %cst_5 = arith.constant dense<0.000000e+00> : vector<2x4xf32>
    %8 = vector.multi_reduction <add>, %7, %cst_5 [2] : vector<2x4x256xf32> to vector<2x4xf32>
    %9 = vector.shape_cast %8 : vector<2x4xf32> to vector<2x4x1xf32>
    %cst_6 = arith.constant dense<0.000000e+00> : vector<4x1xf32>
    %10 = vector.multi_reduction <add>, %9, %cst_6 [0] : vector<2x4x1xf32> to vector<4x1xf32>
    %11 = arith.addf %1, %10 : vector<4x1xf32>
    %cst_7 = arith.constant 0.001953125 : f32
    %12 = vector.broadcast %cst_7 : f32 to vector<4x1xf32>
    %13 = arith.mulf %6, %12 : vector<4x1xf32>
    %cst_8 = arith.constant 0.001953125 : f32
    %14 = vector.broadcast %cst_8 : f32 to vector<4x1xf32>
    %15 = arith.mulf %11, %14 : vector<4x1xf32>
    %16 = arith.mulf %13, %13 : vector<4x1xf32>
    %17 = arith.subf %15, %16 : vector<4x1xf32>
    %cst_9 = arith.constant 0.000000e+00 : f32
    %18 = vector.broadcast %cst_9 : f32 to vector<4x1xf32>
    %19 = arith.maximumf %17, %18 : vector<4x1xf32>
    %cst_10 = arith.constant 9.99999974E-6 : f32
    %20 = vector.broadcast %cst_10 : f32 to vector<4x1xf32>
    %21 = arith.addf %19, %20 : vector<4x1xf32>
    %22 = math.rsqrt %21 : vector<4x1xf32>
    %c0_11 = arith.constant 0 : index
    %c0_12 = arith.constant 0 : index
    %23 = vector.load %arg4[%c0_11, %c0_12] : memref<4x1xf32, #tpu.memory_space<vmem>>, vector<4x1xf32>
    %24 = arith.mulf %23, %22 : vector<4x1xf32>
    %c0_13 = arith.constant 0 : index
    %25 = memref.load %arg1[%c0_13] : memref<1xf32, #tpu.memory_space<smem>>
    %c0_14 = arith.constant 0 : index
    %26 = memref.load %arg2[%c0_14] : memref<1xf32, #tpu.memory_space<smem>>
    %27 = vector.broadcast %26 : f32 to vector<4x1xf32>
    %28 = arith.mulf %27, %24 : vector<4x1xf32>
    %29 = vector.broadcast %25 : f32 to vector<4x1xf32>
    %30 = arith.addf %29, %28 : vector<4x1xf32>
    %31 = vector.shape_cast %30 : vector<4x1xf32> to vector<1x4x1xf32>
    %c0_15 = arith.constant 0 : index
    %c0_16 = arith.constant 0 : index
    %32 = vector.load %arg5[%c0_15, %c0_16] : memref<4x1xf32, #tpu.memory_space<vmem>>, vector<4x1xf32>
    %33 = arith.mulf %13, %24 : vector<4x1xf32>
    %34 = arith.subf %32, %33 : vector<4x1xf32>
    %35 = vector.broadcast %26 : f32 to vector<4x1xf32>
    %36 = arith.mulf %35, %34 : vector<4x1xf32>
    %37 = vector.shape_cast %36 : vector<4x1xf32> to vector<1x4x1xf32>
    %c0_17 = arith.constant 0 : index
    %c0_18 = arith.constant 0 : index
    %c0_19 = arith.constant 0 : index
    %38 = vector.load %arg3[%c0_17, %c0_18, %c0_19] : memref<2x4x256xf32, #tpu.memory_space<vmem>>, vector<2x4x256xf32>
    %39 = vector.broadcast %31 : vector<1x4x1xf32> to vector<2x4x256xf32>
    %40 = arith.mulf %39, %38 : vector<2x4x256xf32>
    %41 = vector.broadcast %37 : vector<1x4x1xf32> to vector<2x4x256xf32>
    %42 = arith.addf %40, %41 : vector<2x4x256xf32>
    %c0_20 = arith.constant 0 : index
    %c0_21 = arith.constant 0 : index
    %c0_22 = arith.constant 0 : index
    %43 = vector.load %arg6[%c0_20, %c0_21, %c0_22] : memref<2x4x256xf32, #tpu.memory_space<vmem>>, vector<2x4x256xf32>
    tpu.vector_store %arg6[%c0_20, %c0_21, %c0_22], %42 {strides = array<i32>} : memref<2x4x256xf32, #tpu.memory_space<vmem>>, vector<2x4x256xf32>,
    return
  }
  func.func @transform_0(%arg0: i32) -> i32 {
    %c0_i32 = arith.constant 0 : i32
    %c0_i32_0 = arith.constant 0 : i32
    return %c0_i32 : i32
  }
  func.func @transform_1(%arg0: i32) -> i32 {
    %c0_i32 = arith.constant 0 : i32
    %c0_i32_0 = arith.constant 0 : i32
    return %c0_i32 : i32
  }
  func.func @transform_2(%arg0: i32) -> (i32, i32, i32) {
    %c0_i32 = arith.constant 0 : i32
    %c0_i32_0 = arith.constant 0 : i32
    %c0_i32_1 = arith.constant 0 : i32
    return %c0_i32, %arg0, %c0_i32_0 : i32, i32, i32
  }
  func.func @transform_3(%arg0: i32) -> (i32, i32) {
    %c0_i32 = arith.constant 0 : i32
    %c0_i32_0 = arith.constant 0 : i32
    return %arg0, %c0_i32 : i32, i32
  }
  func.func @transform_4(%arg0: i32) -> (i32, i32) {
    %c0_i32 = arith.constant 0 : i32
    %c0_i32_0 = arith.constant 0 : i32
    return %arg0, %c0_i32 : i32, i32
  }
  func.func @transform_5(%arg0: i32) -> (i32, i32, i32) {
    %c0_i32 = arith.constant 0 : i32
    %c0_i32_0 = arith.constant 0 : i32
    %c0_i32_1 = arith.constant 0 : i32
    return %c0_i32, %arg0, %c0_i32_0 : i32, i32, i32
  }
}

</mosaic_0001>

<bundles_post_ra>
// kernel: tpu_custom_call.1
= control target key start
LH: loop header
LB: loop body
LE: loop exit
PB: predicated region body
PF: predicated region fallthrough
CT: control target
= control target key end

     0   :  { %12 = vsyncpa [#allocation5], 0  ;;  %s320_s0 = inlined_call_operand.<no memory space> [shape: f32[1], index: 0, kind: input, shape index: {}]   ;;  %s321_s1 = inlined_call_operand.<no memory space> [shape: f32[1], index: 1, kind: input, shape index: {}]   ;;  %s322_s2 = inlined_call_operand.hbm [shape: f32[2,4,256], index: 2, kind: input, shape index: {}]   ;;  %s323_s3 = inlined_call_operand.vmem [shape: f32[4,1], index: 3, kind: input, shape index: {}]   ;;  %s324_s4 = inlined_call_operand.vmem [shape: f32[4,1], index: 4, kind: input, shape index: {}]   ;;  %s325_s5 = inlined_call_operand.hbm [shape: f32[2,4,256], index: 5, kind: output, shape index: {}]  }
   0x1   :  { %13 = vsyncpa [#allocation6], 0  ;;  %s22_s20 = sshll.u32 %s322_s2, 4  ;;  %s247_s21 = smov [#allocation4]   ;;  %s23_s20 = int_to_ptr.hbm [resolvable:$true] %s22_s20 }
   0x2   :  { %s24_s22 = sshll.u32 %s247_s21, 4  ;;  %s248_s23 = smov 128   ;;  %s25_s22 = int_to_ptr.vmem [resolvable:$true] %s24_s22 }
   0x3   :  { %s249_s24 = smov 8  }
   0x4   :  { %30 = dma.hbm_to_vmem [thread:$0]  %s23_s20, 256, %s25_s22, [#allocation5], %s248_s23, %s248_s23, %s249_s24  }
   0x5   :  { %243 = dma.done.wait [#allocation5], 256  }
   0x6   :  { %244 = vsyncadd [#allocation5], 4294967040  ;;  %v39_v0 = vld [vmem:[#allocation4] sm:$0xff]  ;;  %v40_v1 = vld [vmem:[#allocation4 + $0x8] sm:$0xff]  ;;  %vm54_vm0 = vcmask 1043456   ;;  %v250_v28 = vmov 0   ;;  %v118_v49 = vstv %s321_s1  ;;  %v120_v51 = vstv %s320_s0 }
   0x7   :  { %43 = vst [vmem:[#allocation1] ss:$2 sm:$0xff] %v39_v0  ;;  %v69_v2 = vmul.f32 %v39_v0, %v39_v0  ;;  %v70_v3 = vmul.f32 %v40_v1, %v40_v1  ;;  %191 = vset.pattern.permute.xlu2 %v250_v28  ;;  %192 = vset.pattern.permute.xlu0 %v250_v28  ;;  %v114_v47 = vld [vmem:[%s323_s3] sm:$0xf]  ;;  %s251_s0 = smov [#allocation7]   ;;  %s173_s7 = sshll.u32 %s325_s5, 4  ;;  %s174_s7 = int_to_ptr.hbm [resolvable:$true] %s173_s7 }
   0x8   :  { %47 = vst [vmem:[#allocation1 + $0x10] ss:$2 sm:$0xff] %v40_v1  ;;  %v122_v55 = vld [vmem:[%s324_s4] sm:$0xf]  ;;  %s171_s1 = sshll.u32 %s251_s0, 4  ;;  %s172_s1 = int_to_ptr.vmem [resolvable:$true] %s171_s1 }
   0xe   :  { %v44_v4 = vld.sshfl [vmem:[#allocation1] sm:$0xff pattern:$0x75316420]  ;;  %v45_v5 = vld.sshfl [vmem:[#allocation1 + $0x8] sm:$0xff pattern:$0x75316420] }
   0xf   :  { %v55_v6 = vsel %vm54_vm0, %v44_v4, 0.0  ;;  %v56_v7 = vsel %vm54_vm0, %v45_v5, 0.0  ;;  %73 = vst [vmem:[#allocation1] ss:$2 sm:$0xff] %v69_v2 }
  0x10   :  { %v57_v8 = vadd.f32 %v56_v7, %v55_v6  ;;  %v48_v9 = vld.sshfl [vmem:[#allocation1 + $0x10] sm:$0xff pattern:$0x75316420]  ;;  %v49_v10 = vld.sshfl [vmem:[#allocation1 + $0x18] sm:$0xff pattern:$0x75316420] }
  0x11   :  { %77 = vst [vmem:[#allocation1 + $0x10] ss:$2 sm:$0xff] %v70_v3  ;;  %v60_v11 = vsel %vm54_vm0, %v48_v9, 0.0  ;;  %v61_v12 = vsel %vm54_vm0, %v49_v10, 0.0 }
  0x12   :  { %58 = vadd.xlane.f32.xlu0 %v57_v8  ;;  %v62_v15 = vadd.f32 %v61_v12, %v60_v11 }
  0x16   :  { %v74_v13 = vld.sshfl [vmem:[#allocation1] sm:$0xff pattern:$0x75316420]  ;;  %v75_v14 = vld.sshfl [vmem:[#allocation1 + $0x8] sm:$0xff pattern:$0x75316420] }
  0x17   :  { %v84_v16 = vsel %vm54_vm0, %v74_v13, 0.0  ;;  %v85_v17 = vsel %vm54_vm0, %v75_v14, 0.0  ;;  %131 = vst [vmem:[#allocation1] ss:$2 sm:$0xff] %v39_v0 }
  0x18   :  { %v86_v18 = vadd.f32 %v85_v17, %v84_v16  ;;  %v78_v19 = vld.sshfl [vmem:[#allocation1 + $0x10] sm:$0xff pattern:$0x75316420]  ;;  %v79_v20 = vld.sshfl [vmem:[#allocation1 + $0x18] sm:$0xff pattern:$0x75316420] }
  0x19   :  { %135 = vst [vmem:[#allocation1 + $0x10] ss:$2 sm:$0xff] %v40_v1  ;;  %v89_v21 = vsel %vm54_vm0, %v78_v19, 0.0  ;;  %v90_v22 = vsel %vm54_vm0, %v79_v20, 0.0 }
  0x1a   :  { %87 = vadd.xlane.f32.xlu1 %v86_v18  ;;  %63 = vadd.xlane.f32.xlu0 %v62_v15  ;;  %v91_v23 = vadd.f32 %v90_v22, %v89_v21 }
  0x1e   :  { %v133_v59 = vld.sshfl [vmem:[#allocation1 + $0x8] sm:$0xff pattern:$0x75316420]  ;;  %v132_v61 = vld.sshfl [vmem:[#allocation1] sm:$0xff pattern:$0x75316420] }
  0x20   :  { %v137_v60 = vld.sshfl [vmem:[#allocation1 + $0x18] sm:$0xff pattern:$0x75316420]  ;;  %v136_v62 = vld.sshfl [vmem:[#allocation1 + $0x10] sm:$0xff pattern:$0x75316420] }
  0x22   :  { %92 = vadd.xlane.f32.xlu1 %v91_v23 }
  0x85   :  { %v59_v24 = vpop.xlane.xlu0 %58 }
  0x86   :  { %v65_v29 = vsel %vm54_vm0, %v59_v24, 0.0 }
  0x8d   :  { %v88_v25 = vpop.xlane.xlu1 %87  ;;  %v64_v26 = vpop.xlane.xlu0 %63 }
  0x8e   :  { %v66_v27 = vsel %vm54_vm0, %v64_v26, 0.0  ;;  %v94_v33 = vsel %vm54_vm0, %v88_v25, 0.0 }
  0x8f   :  { %v67_v30 = vadd.f32 %v66_v27, %v65_v29 }
  0x91   :  { %v98_v31 = vmul.f32 0.001953125, %v67_v30 }
  0x93   :  { %v100_v36 = vmul.f32 %v98_v31, %v98_v31 }
  0x95   :  { %v93_v32 = vpop.xlane.xlu1 %92 }
  0x96   :  { %v95_v34 = vsel %vm54_vm0, %v93_v32, 0.0 }
  0x97   :  { %v96_v35 = vadd.f32 %v95_v34, %v94_v33 }
  0x99   :  { %v99_v37 = vmul.f32 0.001953125, %v96_v35 }
  0x9b   :  { %v101_v38 = vsub.f32 %v99_v37, %v100_v36 }
  0x9d   :  { %v102_v39 = vmax.f32 %v101_v38, 0.0 }
  0x9f   :  { %v103_v40 = vadd.f32 1e-05, %v102_v39 }
  0xa1   :  { %193 = vrsqrt.f32 %v103_v40  ;;  %vm110_vm2 = vweird.f32 %v103_v40 }
  0xa7   :  { %v194_v41 = vpop.eup %193 }
  0xa8   :  { %v105_v42 = vmul.f32 %v194_v41, %v103_v40  ;;  %vm111_vm1 = vweird.f32 %v194_v41 }
  0xa9   :  { %vm112_vm3 = vmor %vm110_vm2, %vm111_vm1 }
  0xaa   :  { %v106_v43 = vmul.f32 %v194_v41, %v105_v42 }
  0xac   :  { %v107_v44 = vmul.f32 0.5, %v106_v43 }
  0xae   :  { %v108_v45 = vsub.f32 1.5, %v107_v44 }
  0xb0   :  { %v109_v46 = vmul.f32 %v194_v41, %v108_v45 }
  0xb2   :  { %v113_v48 = vsel %vm112_vm3, %v194_v41, %v109_v46 }
  0xb3   :  { %v115_v50 = vmul.f32 %v114_v47, %v113_v48 }
  0xb5   :  { %v119_v52 = vmul.f32 %v118_v49, %v115_v50  ;;  %v123_v54 = vmul.f32 %v115_v50, %v98_v31 }
  0xb7   :  { %v121_v53 = vadd.f32 %v120_v51, %v119_v52  ;;  %v124_v56 = vsub.f32 %v122_v55, %v123_v54 }
  0xb9   :  { %128 = vperm.xlu2 %191, %v121_v53   ;;  %v125_v57 = vmul.f32 %v124_v56, %v118_v49 }
  0xc1   :  { %148 = vperm.xlu2 %191, %v125_v57  }
 0x113   :  { %v129_v58 = vpop.permute.xlu2 %128 }
 0x114   :  { %v143_v63 = vmul.f32 %v133_v59, %v129_v58  ;;  %v145_v0 = vmul.f32 %v137_v60, %v129_v58  ;;  %v142_v2 = vmul.f32 %v132_v61, %v129_v58  ;;  %v144_v3 = vmul.f32 %v136_v62, %v129_v58 }
 0x11b   :  { %v149_v1 = vpop.permute.xlu2 %148 }
 0x11c   :  { %v152_v4 = vadd.f32 %v149_v1, %v143_v63  ;;  %v154_v5 = vadd.f32 %v149_v1, %v145_v0  ;;  %v151_v6 = vadd.f32 %v149_v1, %v142_v2  ;;  %v153_v7 = vadd.f32 %v149_v1, %v144_v3 }
 0x11e   :  { %v159_v8 = vrot.slane %v152_v4, 4  ;;  %v160_v9 = vrot.slane %v154_v5, 4 }
 0x120   :  { %v161_v10 = vsel %vm54_vm0, %v151_v6, %v159_v8  ;;  %v162_v11 = vsel %vm54_vm0, %v153_v7, %v160_v9 }
 0x121   :  { %165 = vst [vmem:[#allocation7] sm:$0xff] %v161_v10 }
 0x122   :  { %166 = vst [vmem:[#allocation7 + $0x8] sm:$0xff] %v162_v11 }
 0x123   :  { %179 = dma.vmem_to_hbm [thread:$0]  %s172_s1, 256, %s174_s7, [#allocation6], %s248_s23, %s248_s23, %s249_s24  }
 0x124   :  { %245 = dma.done.wait [#allocation6], 256  }
 0x125   :  { %246 = vsyncadd [#allocation6], 4294967040 }
 0x126   :  { %184 = vsyncpa [#allocation5], 1 }
 0x127   :  { %185 = vsyncpa [#allocation6], 1 }

</bundles_post_ra>
